<compile_context>
chip_gen: v7x
topology: tpu7x:2x2x1
jax: 0.10.0
libtpu: 0.0.40
codegen_flags: <defaults>
</compile_context>

<pallas_src>
import functools

import jax
import jax.numpy as jnp
from jax.experimental import pallas as pl
from jax.experimental.pallas import tpu as pltpu

BETA = 0.5
THRESHOLD = 1.0

_LANE = 128
_SUBLANE = 8
# 2048 rows x 128 lanes x 4 B = 1 MiB per array per pipeline buffer.
_MAX_BLOCK_ROWS = 2048


def _leaky_kernel(inp_ref, mem_ref, spk_ref, mem_out_ref, *, beta, threshold):
    mem = mem_ref[...]
    inp = inp_ref[...]
    # FastSigmoid forward: heaviside of (mem - threshold)
    spk = (mem - threshold > 0.0).astype(mem.dtype)
    # reset = (spk - threshold).detach()  -> forward value only
    reset = spk - threshold
    spk_ref[...] = spk
    mem_out_ref[...] = beta * mem + inp - reset


def _round_up(x, m):
    return ((x + m - 1) // m) * m


def leaky_sigmoid_surrogate(input_, mem, *, beta=BETA, threshold=THRESHOLD):
    """Forward of LeakySigmoidSurrogate. Returns (spk, mem_new), same shape/dtype as inputs."""
    assert input_.shape == mem.shape
    orig_shape = input_.shape
    dtype = input_.dtype

    n = input_.size
    # Only pad when the element count is not a multiple of the 128-lane width
    # (rare for conv activations); otherwise reshape is free (no extra HBM pass).
    pad = (-n) % _LANE

    def _flatten(x):
        x = x.reshape(-1)
        if pad:
            x = jnp.pad(x, (0, pad))
        return x.reshape(-1, _LANE)

    xi = _flatten(input_)
    xm = _flatten(mem)
    rows = xi.shape[0]

    # Large lane-dense tiles, but aim for >= ~4 grid steps so v7x's two
    # TensorCores can split the parallel axis; cap at 1 MiB/array so
    # double-buffered VMEM (8 MiB total) fits every generation's default limit.
    block_rows = min(_MAX_BLOCK_ROWS,
                     max(_SUBLANE, _round_up(pl.cdiv(rows, 4), _SUBLANE)))
    grid = (pl.cdiv(rows, block_rows),)  # Pallas masks the partial last block.

    spec = pl.BlockSpec((block_rows, _LANE), lambda i: (i, 0))

    kernel = functools.partial(_leaky_kernel, beta=float(beta),
                               threshold=float(threshold))

    # TODO(synk): spk is strictly {0,1}; emitting it as bf16/int8 would cut HBM
    # traffic ~12-25% if downstream layers accept it, but PyTorch .float()
    # semantics keep it at the input dtype here.
    spk_f, mem_f = pl.pallas_call(
        kernel,
        out_shape=(
            jax.ShapeDtypeStruct((rows, _LANE), dtype),
            jax.ShapeDtypeStruct((rows, _LANE), dtype),
        ),
        grid_spec=pltpu.PrefetchScalarGridSpec(
            num_scalar_prefetch=0,
            grid=grid,
            in_specs=[spec, spec],
            out_specs=[spec, spec],
        ),
        compiler_params=pltpu.CompilerParams(
            dimension_semantics=("parallel",)),
    )(xi, xm)

    def _unflatten(x):
        x = x.reshape(-1)
        if pad:
            x = x[:n]
        return x.reshape(orig_shape)

    return _unflatten(spk_f), _unflatten(mem_f)


def _reference(input_, mem, beta=BETA, threshold=THRESHOLD):
    spk = (mem - threshold > 0.0).astype(mem.dtype)
    reset = spk - threshold
    mem_new = beta * mem + input_ - reset
    return spk, mem_new


if __name__ == "__main__":
    key = jax.random.PRNGKey(0)
    k1, k2 = jax.random.split(key)
    # Small NCHW activations / membrane state consistent with an SNN CNN layer.
    x = jax.random.normal(k1, (2, 4, 16, 16), dtype=jnp.float32)
    mem = jax.random.normal(k2, (2, 4, 16, 16), dtype=jnp.float32) + 0.5

    spk, mem_new = leaky_sigmoid_surrogate(x, mem)
    jax.block_until_ready((spk, mem_new))

    spk_ref, mem_ref = _reference(x, mem)
    assert spk.shape == x.shape and mem_new.shape == x.shape
    assert jnp.allclose(spk, spk_ref)
    assert jnp.allclose(mem_new, mem_ref, atol=1e-6)

    # Also exercise a larger, non-block-aligned case to check the partial
    # last block path (still a multiple of 128 elements -> no padding pass).
    k3, k4 = jax.random.split(k1)
    xb = jax.random.normal(k3, (4, 8, 32, 32), dtype=jnp.float32)
    mb = jax.random.normal(k4, (4, 8, 32, 32), dtype=jnp.float32) + 0.5
    spk2, mem2 = leaky_sigmoid_surrogate(xb, mb)
    jax.block_until_ready((spk2, mem2))
    spk2_ref, mem2_ref = _reference(xb, mb)
    assert jnp.allclose(spk2, spk2_ref)
    assert jnp.allclose(mem2, mem2_ref, atol=1e-6)

    print("KERNEL_OK")
</pallas_src>

<mosaic_0001>
module attributes {stable_mosaic.version = 11 : i64} {
  func.func @_leaky_kernel(%arg0: i32, %arg1: memref<8x128xf32, #tpu.memory_space<vmem>>, %arg2: memref<8x128xf32, #tpu.memory_space<vmem>>, %arg3: memref<8x128xf32, #tpu.memory_space<vmem>>, %arg4: memref<8x128xf32, #tpu.memory_space<vmem>>) attributes {dimension_semantics = [#tpu.dimension_semantics<parallel>], iteration_bounds = array<i64: 2>, scalar_prefetch = 0 : i64, scratch_operands = 0 : i64, tpu.core_type = #tpu.core_type<tc>, window_params = [{transform_indices = @transform_0, window_bounds = array<i64: 8, 128>}, {transform_indices = @transform_1, window_bounds = array<i64: 8, 128>}, {transform_indices = @transform_2, window_bounds = array<i64: 8, 128>}, {transform_indices = @transform_3, window_bounds = array<i64: 8, 128>}]} {
    %c0 = arith.constant 0 : index
    %c0_0 = arith.constant 0 : index
    %0 = vector.load %arg2[%c0, %c0_0] : memref<8x128xf32, #tpu.memory_space<vmem>>, vector<8x128xf32>
    %c0_1 = arith.constant 0 : index
    %c0_2 = arith.constant 0 : index
    %1 = vector.load %arg1[%c0_1, %c0_2] : memref<8x128xf32, #tpu.memory_space<vmem>>, vector<8x128xf32>
    %cst = arith.constant 1.000000e+00 : f32
    %2 = vector.broadcast %cst : f32 to vector<8x128xf32>
    %3 = arith.subf %0, %2 : vector<8x128xf32>
    %cst_3 = arith.constant 0.000000e+00 : f32
    %4 = vector.broadcast %cst_3 : f32 to vector<8x128xf32>
    %5 = arith.cmpf ogt, %3, %4 : vector<8x128xf32>
    %6 = arith.extui %5 : vector<8x128xi1> to vector<8x128xi32>
    %7 = arith.sitofp %6 : vector<8x128xi32> to vector<8x128xf32>
    %cst_4 = arith.constant 1.000000e+00 : f32
    %8 = vector.broadcast %cst_4 : f32 to vector<8x128xf32>
    %9 = arith.subf %7, %8 : vector<8x128xf32>
    %c0_5 = arith.constant 0 : index
    %c0_6 = arith.constant 0 : index
    %10 = vector.load %arg3[%c0_5, %c0_6] : memref<8x128xf32, #tpu.memory_space<vmem>>, vector<8x128xf32>
    tpu.vector_store %arg3[%c0_5, %c0_6], %7 {strides = array<i32>} : memref<8x128xf32, #tpu.memory_space<vmem>>, vector<8x128xf32>,
    %cst_7 = arith.constant 5.000000e-01 : f32
    %11 = vector.broadcast %cst_7 : f32 to vector<8x128xf32>
    %12 = arith.mulf %11, %0 : vector<8x128xf32>
    %13 = arith.addf %12, %1 : vector<8x128xf32>
    %14 = arith.subf %13, %9 : vector<8x128xf32>
    %c0_8 = arith.constant 0 : index
    %c0_9 = arith.constant 0 : index
    %15 = vector.load %arg4[%c0_8, %c0_9] : memref<8x128xf32, #tpu.memory_space<vmem>>, vector<8x128xf32>
    tpu.vector_store %arg4[%c0_8, %c0_9], %14 {strides = array<i32>} : memref<8x128xf32, #tpu.memory_space<vmem>>, vector<8x128xf32>,
    return
  }
  func.func @transform_0(%arg0: i32) -> (i32, i32) {
    %c0_i32 = arith.constant 0 : i32
    %c0_i32_0 = arith.constant 0 : i32
    return %arg0, %c0_i32 : i32, i32
  }
  func.func @transform_1(%arg0: i32) -> (i32, i32) {
    %c0_i32 = arith.constant 0 : i32
    %c0_i32_0 = arith.constant 0 : i32
    return %arg0, %c0_i32 : i32, i32
  }
  func.func @transform_2(%arg0: i32) -> (i32, i32) {
    %c0_i32 = arith.constant 0 : i32
    %c0_i32_0 = arith.constant 0 : i32
    return %arg0, %c0_i32 : i32, i32
  }
  func.func @transform_3(%arg0: i32) -> (i32, i32) {
    %c0_i32 = arith.constant 0 : i32
    %c0_i32_0 = arith.constant 0 : i32
    return %arg0, %c0_i32 : i32, i32
  }
}

</mosaic_0001>

<bundles_post_ra>
// kernel: tpu_custom_call.1
= control target key start
LH: loop header
LB: loop body
LE: loop exit
PB: predicated region body
PF: predicated region fallthrough
CT: control target
= control target key end

     0   :  { %9 = vsyncpa [#allocation3], 0  ;;  %s922_s0 = inlined_call_operand.hbm [shape: f32[16,128], index: 0, kind: input, shape index: {}]   ;;  %s923_s1 = inlined_call_operand.hbm [shape: f32[16,128], index: 1, kind: input, shape index: {}]   ;;  %s924_s2 = inlined_call_operand.hbm [shape: f32[16,128], index: 2, kind: output, shape index: {0}]   ;;  %s925_s3 = inlined_call_operand.hbm [shape: f32[16,128], index: 3, kind: output, shape index: {1}]  }
   0x1   :  { %11 = vsyncpa [#allocation3 + $0x1], 0 }
   0x2   :  { %12 = vsyncpa [#allocation6], 0 }
   0x3   :  { %14 = vsyncpa [#allocation6 + $0x1], 0 }
   0x4   :  { %15 = vsyncpa [#allocation4], 0 }
   0x5   :  { %17 = vsyncpa [#allocation4 + $0x1], 0 }
   0x6   :  { %18 = vsyncpa [#allocation9], 0 }
   0x7   :  { %20 = vsyncpa [#allocation9 + $0x1], 0  ;;  %s670_s12 = smov 0   ;;  %s672_s13 = smov 0  }
   0x8   :  { %s674_s14 = smov 0   ;;  %s676_s15 = smov 0  }
   0x9 LB: > { %s691_s16 = sadd.s32 4294967295, %s643_s15   ;;  %s403_s17 = sadd.s32 4294967294, %s643_s15   ;;  %s643_s15 = sphi %s676_s15, %s944_s15   ;;  %s639_s14 = sphi %s674_s14, %s943_s14   ;;  %s635_s13 = sphi %s672_s13, %s942_s13   ;;  %s631_s12 = sphi %s670_s12, %s941_s12  }
   0xa   : > { %s695_s18 = sadd.s32 1, %s643_s15   ;;  %s33_s19 = sadd.s32 1, %s639_s14 }
   0xb   : > { %s30_s20 = ssub.s32 %s643_s15, %s695_s18  ;;  %p40_p0 = scmp.ne.s32.totalorder %s639_s14, %s635_s13 }
   0xc   : > { %p31_p1 = scmp.eq.s32.totalorder %s30_s20, 0  ;;  %p41_p2 = scmp.eq.s32.totalorder %s643_s15, 0 }
   0xd   : > { %p46_p3 = scmp.ne.s32.totalorder %s635_s13, %s631_s12  ;;  %p47_p4 = scmp.eq.s32.totalorder %s691_s16, 0 }
   0xe   : > { %s707_s21 = scalar_select %p31_p1, %s639_s14, %s33_s19  }
   0xf   : > { %p709_p5 = por %p41_p2, %p40_p0  ;;  %p713_p6 = por %p47_p4, %p46_p3 }
  0x10   : > { %p96_p7 = scmp.eq.s32.totalorder %s691_s16, 1  ;;  %p102_p8 = scmp.eq.s32.totalorder %s403_s17, 1 }
  0x11   : > { %s929_s23 = scalar_select %p713_p6, 1, 0 }
  0x12   : > { %p446_p10 = scmp.lt.s32.totalorder %s643_s15, 2  ;;  %p720_p11 = por %p96_p7, %p40_p0 }
  0x13   : > { %p724_p12 = por %p102_p8, %p46_p3  ;;  %s729_s26 = sand.u32 1, %s639_s14  }
  0x14   : > { %s930_s24 = scalar_select %p720_p11, 1, 0 }
  0x15   : > { %s931_s25 = scalar_select %p724_p12, 1, 0 }
  0x16   : > { %s407_s27 = sshll.u32 %s643_s15, 7  ;;  %s406_s28 = sshll.u32 %s729_s26, 3 }
  0x17   : > { %s738_s4 = scalar_lea.hbm %s922_s0, %s407_s27  ;;  %s152_s5 = scalar_lea.vmem [#allocation2], %s406_s28 }
  0x18   : > { %s159_s6 = sshll.u32 %s152_s5, 4  ;;  %p744_p13 = pnand %p446_p10, %p709_p5  ;;  %s748_s6 = int_to_ptr.vmem [resolvable:$true] %s159_s6 }
  0x19   : > { %s149_s8 = scalar_lea.sflag [#allocation3], %s729_s26  ;;  %s481_s9 = scalar_lea.hbm %s738_s4, 128 }
  0x1a   : > { %p482_p2 = scmp.ne.s32.totalorder %s738_s4, %s481_s9  ;;  %p483_p3 = pneg %p744_p13 }
  0x1b   : > { %s486_s17 = scalar_lea.hbm %s922_s0, 256  ;;  %p487_p5 = scmp.lt.u32.totalorder %s738_s4, %s922_s0 }
  0x1c   : > { %p484_p4 = pnand %p483_p3, %p482_p2  ;;  %p488_p8 = scmp.lt.u32.totalorder %s486_s17, %s481_s9 }
  0x1d   : > { %p490_p9 = scmp.lt.u32.totalorder %s481_s9, %s738_s4 }
  0x1e   : > { %p485_p7 = pneg %p484_p4  ;;  %p489_p10 = por %p488_p8, %p487_p5 }
  0x20   : > { %p491_p0 = por %p490_p9, %p489_p10 }
  0x22   : > { %p492_p1 = pnand %p491_p0, %p485_p7 }
  0x24   : > { %495 = shalt.err (!%p492_p1)
}
  0x25   : > { %s496_s22 = scalar_lea.vmem %s748_s6, 128  ;;  %s645_s29 = smov [#allocation2]  }
  0x26   : > { %p497_p2 = scmp.ne.s32.totalorder %s748_s6, %s496_s22  ;;  %s501_s30 = sshll.u32 %s645_s29, 4  ;;  %s502_s30 = int_to_ptr.vmem [resolvable:$false] %s501_s30 }
  0x27   : > { %s503_s5 = scalar_lea.vmem %s502_s30, 256  ;;  %p504_p11 = scmp.lt.s32.totalorder %s748_s6, %s502_s30 }
  0x28   : > { %p499_p4 = pnand %p497_p2, %p483_p3  ;;  %p505_p5 = scmp.lt.s32.totalorder %s503_s5, %s496_s22 }
  0x2a   : > { %p500_p12 = pneg %p499_p4  ;;  %p506_p8 = por %p505_p5, %p504_p11 }
  0x2c   : > { %p507_p9 = pnand %p506_p8, %p500_p12 }
  0x2e   : > { %510 = shalt.err (!%p507_p9)
}
  0x2f   : > { %435 = dma.hbm_to_vmem [thread:$0]  (!%p744_p13), %s738_s4, 128, %s748_s6, %s149_s8  }
  0x30   : > { %p933_p0 = scmp.lt.s32.totalorder %s643_s15, 3  ;;  %p934_p1 = scmp.ge.s32.totalorder %s643_s15, 1 }
  0x31   : > { %s791_s17 = scalar_lea.hbm %s923_s1, %s407_s27  ;;  %s170_s19 = scalar_lea.vmem [#allocation5], %s406_s28 }
  0x32   : > { %p782_p7 = pnand %p934_p1, %p933_p0  ;;  %s177_s20 = sshll.u32 %s170_s19, 4  ;;  %s178_s20 = int_to_ptr.vmem [resolvable:$true] %s177_s20 }
  0x33   : > { %s167_s4 = scalar_lea.sflag [#allocation6], %s729_s26  ;;  %s511_s6 = scalar_lea.hbm %s791_s17, 128 }
  0x34   : > { %s935_s9 = scalar_select %p782_p7, 1, 0 }
  0x35   : > { %p512_p11 = scmp.ne.s32.totalorder %s791_s17, %s511_s6  ;;  %s516_s27 = scalar_lea.hbm %s923_s1, 256 }
  0x36   : > { %p517_p2 = scmp.lt.u32.totalorder %s791_s17, %s923_s1  ;;  %p518_p4 = scmp.lt.u32.totalorder %s516_s27, %s511_s6 }
  0x37   : > { %p514_p12 = pnand %p512_p11, %p483_p3  ;;  %p520_p8 = scmp.lt.u32.totalorder %s511_s6, %s791_s17 }
  0x38   : > { %p519_p5 = por %p518_p4, %p517_p2 }
  0x39   : > { %p515_p10 = pneg %p514_p12 }
  0x3a   : > { %p521_p9 = por %p520_p8, %p519_p5 }
  0x3c   : > { %p522_p0 = pnand %p521_p9, %p515_p10 }
  0x3e   : > { %525 = shalt.err (!%p522_p0)
}
  0x3f   : > { %s526_s26 = scalar_lea.vmem %s178_s20, 128  ;;  %s646_s28 = smov [#allocation5]  }
  0x40   : > { %p527_p1 = scmp.ne.s32.totalorder %s178_s20, %s526_s26  ;;  %s531_s5 = sshll.u32 %s646_s28, 4  ;;  %s532_s5 = int_to_ptr.vmem [resolvable:$false] %s531_s5 }
  0x41   : > { %s533_s10 = scalar_lea.vmem %s532_s5, 256  ;;  %p534_p6 = scmp.lt.s32.totalorder %s178_s20, %s532_s5 }
  0x42   : > { %p529_p11 = pnand %p527_p1, %p483_p3  ;;  %p535_p7 = scmp.lt.s32.totalorder %s533_s10, %s526_s26 }
  0x44   : > { %p530_p12 = pneg %p529_p11  ;;  %p536_p2 = por %p535_p7, %p534_p6 }
  0x46   : > { %p537_p4 = pnand %p536_p2, %p530_p12 }
  0x48   : > { %540 = shalt.err (!%p537_p4)
}
  0x49   : > { %438 = dma.hbm_to_vmem [thread:$0]  (!%p744_p13), %s791_s17, 128, %s178_s20, %s167_s4  }
  0x4a   : > { %p936_p10 = scmp.ne.s32.totalorder %s935_s9, 0 }
  0x4b   : > { %s818_s11 = sand.u32 (!%p936_p10), 1, %s635_s13   ;;  %p937_p6 = scmp.ne.s32.totalorder (!%p936_p10), %s929_s23, 0 }
  0x4c   : > { %186 = sbr.rel (%p936_p10) target bundleno = 136 (0x88), region = 28  ;;  %s821_s19 = sshll.u32 (!%p936_p10), %s818_s11, 3 }
  0x4d   : > { %s189_s6 = scalar_lea.sflag (!%p936_p10), [#allocation3], %s818_s11  ;;  %s192_s8 = scalar_lea.vmem (!%p936_p10), [#allocation2], %s821_s19 }
  0x53   : > { %614 = dma.done.wait (%p937_p6), %s189_s6, 128  }
  0x54   : > { %616 = vsyncadd (%p937_p6), %s189_s6, 4294967168  ;;  %s198_s7 = scalar_lea.sflag [#allocation6], %s818_s11  ;;  %s201_s9 = scalar_lea.vmem [#allocation5], %s821_s19 }
  0x55   : > { %618 = dma.done.wait (%p937_p6), %s198_s7, 128  }
  0x56   : > { %620 = vsyncadd (%p937_p6), %s198_s7, 4294967168  ;;  %s226_s17 = scalar_lea.vmem [#allocation7], %s821_s19  ;;  %v234_v0 = vld [vmem:[%s201_s9] sm:$0xff]  ;;  %v235_v1 = vld [vmem:[%s192_s8] sm:$0xff]  ;;  %s420_s4 = sshll.u32 %s691_s16, 7  ;;  %v647_v5 = vmov 0.0  }
  0x57   : > { %s265_s20 = sshll.u32 %s226_s17, 4  ;;  %v415_v2 = vadd.f32 -1.0, %v234_v0  ;;  %v242_v3 = vmul.f32 0.5, %v234_v0  ;;  %s233_s23 = scalar_lea.vmem [#allocation8], %s821_s19  ;;  %s837_s20 = int_to_ptr.vmem [resolvable:$true] %s265_s20 }
  0x58   : > { %s278_s22 = sshll.u32 %s233_s23, 4  ;;  %s847_s30 = scalar_lea.hbm %s924_s2, %s420_s4  ;;  %s849_s22 = int_to_ptr.vmem [resolvable:$true] %s278_s22 }
  0x59   : > { %vm237_vm0 = vcmp.gt.f32.partialorder %v415_v2, 0.0  ;;  %v243_v4 = vadd.f32 %v242_v3, %v235_v1  ;;  %s247_s26 = scalar_lea.sflag [#allocation4], %s818_s11  ;;  %s541_s28 = scalar_lea.vmem %s837_s20, 128 }
  0x5a   : > { %v416_v6 = vsel %vm237_vm0, 1.0, %v647_v5  ;;  %p542_p13 = scmp.ne.s32.totalorder %s837_s20, %s541_s28  ;;  %p938_p3 = scmp.ne.s32.totalorder %s930_s24, 0 }
  0x5b   : > { %v417_v7 = vadd.f32 -1.0, %v416_v6  ;;  %241 = vst [vmem:[%s226_s17] sm:$0xff] %v416_v6  ;;  %s648_s5 = smov [#allocation7]  }
  0x5c   : > { %p543_p7 = pnand %p542_p13, %p938_p3  ;;  %s545_s10 = sshll.u32 %s648_s5, 4  ;;  %s546_s10 = int_to_ptr.vmem [resolvable:$false] %s545_s10 }
  0x5d   : > { %s547_s6 = scalar_lea.vmem %s546_s10, 256  ;;  %p548_p8 = scmp.lt.s32.totalorder %s837_s20, %s546_s10 }
  0x5e   : > { %p544_p5 = pneg %p543_p7  ;;  %p549_p9 = scmp.lt.s32.totalorder %s547_s6, %s541_s28 }
  0x60   : > { %p550_p0 = por %p549_p9, %p548_p8 }
  0x62   : > { %p551_p1 = pnand %p550_p0, %p544_p5 }
  0x64   : > { %554 = shalt.err (!%p551_p1)
}
  0x65   : > { %s555_s8 = scalar_lea.hbm %s847_s30, 128  ;;  %s559_s17 = scalar_lea.hbm %s924_s2, 256 }
  0x66   : > { %p556_p11 = scmp.ne.s32.totalorder %s847_s30, %s555_s8  ;;  %p560_p4 = scmp.lt.u32.totalorder %s847_s30, %s924_s2 }
  0x67   : > { %p561_p10 = scmp.lt.u32.totalorder %s559_s17, %s555_s8  ;;  %p563_p13 = scmp.lt.u32.totalorder %s555_s8, %s847_s30 }
  0x68   : > { %p557_p12 = pnand %p556_p11, %p938_p3 }
  0x69   : > { %p562_p6 = por %p561_p10, %p560_p4 }
  0x6a   : > { %p558_p2 = pneg %p557_p12 }
  0x6b   : > { %p564_p7 = por %p563_p13, %p562_p6 }
  0x6d   : > { %p565_p5 = pnand %p564_p7, %p558_p2 }
  0x6f   : > { %568 = shalt.err (!%p565_p5)
}
  0x70   : > { %428 = dma.vmem_to_hbm [thread:$0]  (%p938_p3), %s837_s20, 128, %s847_s30, %s247_s26   ;;  %v244_v8 = vsub.f32 %v243_v4, %v417_v7 }
  0x71   : > { %s878_s10 = scalar_lea.hbm %s925_s3, %s420_s4  ;;  %s252_s6 = scalar_lea.sflag [#allocation9], %s818_s11 }
  0x72   : > { %245 = vst [vmem:[%s233_s23] sm:$0xff] %v244_v8  ;;  %s569_s8 = scalar_lea.vmem %s849_s22, 128  ;;  %s649_s7 = smov [#allocation8]  }
  0x73   : > { %p570_p8 = scmp.ne.s32.totalorder %s849_s22, %s569_s8  ;;  %s573_s9 = sshll.u32 %s649_s7, 4  ;;  %s574_s9 = int_to_ptr.vmem [resolvable:$false] %s573_s9 }
  0x74   : > { %s575_s17 = scalar_lea.vmem %s574_s9, 256  ;;  %p576_p1 = scmp.lt.s32.totalorder %s849_s22, %s574_s9 }
  0x75   : > { %p571_p9 = pnand %p570_p8, %p938_p3  ;;  %p577_p11 = scmp.lt.s32.totalorder %s575_s17, %s569_s8 }
  0x77   : > { %p572_p0 = pneg %p571_p9  ;;  %p578_p12 = por %p577_p11, %p576_p1 }
  0x79   : > { %p579_p2 = pnand %p578_p12, %p572_p0 }
  0x7b   : > { %582 = shalt.err (!%p579_p2)
}
  0x7c   : > { %s583_s16 = scalar_lea.hbm %s878_s10, 128  ;;  %s587_s20 = scalar_lea.hbm %s925_s3, 256 }
  0x7d   : > { %p584_p4 = scmp.ne.s32.totalorder %s878_s10, %s583_s16  ;;  %p588_p13 = scmp.lt.u32.totalorder %s878_s10, %s925_s3 }
  0x7e   : > { %p589_p7 = scmp.lt.u32.totalorder %s587_s20, %s583_s16  ;;  %p591_p8 = scmp.lt.u32.totalorder %s583_s16, %s878_s10 }
  0x7f   : > { %p585_p10 = pnand %p584_p4, %p938_p3 }
  0x80   : > { %p590_p5 = por %p589_p7, %p588_p13 }
  0x81   : > { %p586_p6 = pneg %p585_p10 }
  0x82   : > { %p592_p9 = por %p591_p8, %p590_p5 }
  0x84   : > { %p593_p0 = pnand %p592_p9, %p586_p6 }
  0x86   : > { %596 = shalt.err (!%p593_p0)
}
  0x87   : > { %429 = dma.vmem_to_hbm [thread:$0]  (%p938_p3), %s849_s22, 128, %s878_s10, %s252_s6  }
  0x88 PF: > { %s290_s30 = sand.u32 1, %s631_s12   ;;  %p939_p1 = scmp.ne.s32.totalorder %s931_s25, 0 }
  0x89   : > { %p940_p11 = scmp.ge.s32.totalorder %s643_s15, 2  ;;  %s291_s26 = scalar_lea.sflag [#allocation4], %s290_s30 }
  0x8b   : > { %p440_p12 = pnand %p940_p11, %p939_p1 }
  0x8d   : > { %622 = dma.done.wait (!%p440_p12), %s291_s26, 128  }
  0x8e   : > { %624 = vsyncadd (!%p440_p12), %s291_s26, 4294967168  ;;  %s300_s27 = scalar_lea.sflag [#allocation9], %s290_s30 }
  0x8f   : > { %626 = dma.done.wait (!%p440_p12), %s300_s27, 128  }
  0x90   : > { %628 = vsyncadd (!%p440_p12), %s300_s27, 4294967168  ;;  %p23_p3 = scmp.ge.s32.totalorder %s695_s18, 4   ;;  %s941_s12 = smov %s635_s13 }
  0x91   : > { %s942_s13 = smov %s639_s14  ;;  %s943_s14 = smov %s707_s21 }
  0x92   : > { %s944_s15 = smov %s695_s18  ;;  %25 = sbr.rel (!%p23_p3) target bundleno = 9 (0x9), region = 103 }
  0x99   :  { %305 = vsyncpa [#allocation3], 1 }
  0x9a   :  { %307 = vsyncpa [#allocation3 + $0x1], 1 }
  0x9b   :  { %308 = vsyncpa [#allocation6], 1 }
  0x9c   :  { %310 = vsyncpa [#allocation6 + $0x1], 1 }
  0x9d   :  { %311 = vsyncpa [#allocation4], 1 }
  0x9e   :  { %313 = vsyncpa [#allocation4 + $0x1], 1 }
  0x9f   :  { %314 = vsyncpa [#allocation9], 1 }
  0xa0   :  { %316 = vsyncpa [#allocation9 + $0x1], 1 }

</bundles_post_ra>
